<compile_context>
chip_gen: v5e
topology: v5e:2x2
jax: 0.10.0
libtpu: 0.0.40
codegen_flags: <defaults>
</compile_context>

<pallas_src>
import jax
import jax.numpy as jnp
from jax.experimental import pallas as pl
from jax.experimental.pallas import tpu as pltpu

_LANE = 128                           # last dim of every block is exactly 128
_TILE_BYTES_TARGET = 2 * 1024 * 1024  # ~2 MiB per operand tile


def _fade_in_kernel(alpha_ref, a_ref, b_ref, o_ref):
    # alpha_ref: SMEM (1,) f32
    # a_ref/b_ref/o_ref: VMEM (row_tile, 128)
    alpha = alpha_ref[0]
    out = a_ref[...] * (1.0 - alpha) + b_ref[...] * alpha
    o_ref[...] = out.astype(o_ref.dtype)


def _round_up(x, m):
    return ((x + m - 1) // m) * m


def _cdiv(a, b):
    return -(-a // b)


def _split(rows, sublane, target_rows):
    """Split `rows` (multiple of sublane) into blocks of <= target_rows.

    Prefers an even step count (v7x TensorCore balance) that divides `rows`
    exactly (no padding).  Returns (row_tile, steps, rows_padded).
    """
    steps = _cdiv(rows, target_rows)
    if steps % 2:
        steps += 1
    # Prefer a step count with zero padding.
    for s in range(steps, steps + 16, 2):
        if rows % s == 0 and (rows // s) % sublane == 0:
            return rows // s, s, rows
    # Fallback: tiny tail padding (< steps*sublane rows).
    row_tile = _round_up(_cdiv(rows, steps), sublane)
    rows_p = row_tile * _cdiv(rows, row_tile)
    return row_tile, rows_p // row_tile, rows_p


def fade_in(x0, x1, alpha):
    """Pallas forward of FadeInLayer: x0*(1-alpha) + x1*alpha (same shape as x0)."""
    assert x0.shape == x1.shape and x0.dtype == x1.dtype
    shape = x0.shape
    dtype = x0.dtype
    total = int(x0.size)
    if total == 0:
        return x0

    itemsize = jnp.dtype(dtype).itemsize
    sublane = {4: 8, 2: 16, 1: 32}.get(itemsize, 8)
    target_rows = max(
        sublane, (_TILE_BYTES_TARGET // (_LANE * itemsize)) // sublane * sublane
    )

    rows = _cdiv(total, _LANE)
    ragged = (total != rows * _LANE)

    a_flat = x0.reshape(-1)
    b_flat = x1.reshape(-1)

    if not ragged and rows <= target_rows:
        # Single full-array block: no pad, grid=(1,).  (A block equal to the
        # full array dims is exempt from the (8,128) divisibility rule.)
        row_tile, rows_p = rows, rows
    elif not ragged and rows % sublane == 0:
        # Large aligned slab: split into even, ~2 MiB/operand blocks, no pad
        # when a dividing step count exists.
        row_tile, _, rows_p = _split(rows, sublane, target_rows)
    else:
        # Ragged tail: pad up to an aligned slab (extra HBM traffic).
        rows_a = _round_up(rows, sublane)
        if rows_a <= target_rows:
            row_tile, rows_p = rows_a, rows_a
        else:
            row_tile, _, rows_p = _split(rows_a, sublane, target_rows)

    pad = rows_p * _LANE - total
    if pad:
        a_flat = jnp.pad(a_flat, (0, pad))
        b_flat = jnp.pad(b_flat, (0, pad))

    a = a_flat.reshape(rows_p, _LANE)
    b = b_flat.reshape(rows_p, _LANE)
    alpha_arr = jnp.asarray(alpha, jnp.float32).reshape(1)

    out2d = pl.pallas_call(
        _fade_in_kernel,
        out_shape=jax.ShapeDtypeStruct((rows_p, _LANE), dtype),
        grid=(rows_p // row_tile,),
        in_specs=[
            pl.BlockSpec(memory_space=pltpu.MemorySpace.SMEM),   # alpha scalar
            pl.BlockSpec((row_tile, _LANE), lambda i: (i, 0)),   # x[0] tile
            pl.BlockSpec((row_tile, _LANE), lambda i: (i, 0)),   # x[1] tile
        ],
        out_specs=pl.BlockSpec((row_tile, _LANE), lambda i: (i, 0)),
        compiler_params=pltpu.CompilerParams(
            dimension_semantics=("parallel",),
            vmem_limit_bytes=32 * 1024 * 1024,
        ),
    )(alpha_arr, a, b)

    out_flat = out2d.reshape(-1)
    if pad:
        out_flat = out_flat[:total]
    return out_flat.reshape(shape)


class FadeInLayer:
    """Mirror of the PyTorch module: holds alpha, forward blends two tensors."""

    def __init__(self, config=None):
        self.alpha = 0.0

    def update_alpha(self, delta):
        self.alpha = max(0.0, min(self.alpha + delta, 1.0))

    def __call__(self, x):
        # x is a sequence of two same-shaped tensors, like the PyTorch forward.
        return fade_in(x[0], x[1], self.alpha)


if __name__ == "__main__":
    key = jax.random.PRNGKey(0)
    k0, k1 = jax.random.split(key)
    shape = (2, 4, 16, 16)                       # batch=2, channels=4, spatial=16
    x0 = jax.random.normal(k0, shape, dtype=jnp.float32)
    x1 = jax.random.normal(k1, shape, dtype=jnp.float32)

    layer = FadeInLayer()
    layer.update_alpha(0.3)                      # partially faded in

    out = layer((x0, x1))
    out = jax.block_until_ready(out)

    alpha = layer.alpha
    ref = x0 * (1.0 - alpha) + x1 * alpha
    assert out.shape == shape, out.shape
    assert jnp.allclose(out, ref, atol=1e-6, rtol=1e-6), \
        float(jnp.max(jnp.abs(out - ref)))

    # boundary alphas (module init value 0.0 and fully faded 1.0)
    for a in (0.0, 1.0):
        o = jax.block_until_ready(fade_in(x0, x1, a))
        r = x0 * (1.0 - a) + x1 * a
        assert jnp.allclose(o, r, atol=1e-6, rtol=1e-6)

    # ragged (non-divisible) shape exercises the padded fallback path
    shape_r = (3, 5, 7)
    y0 = jax.random.normal(k0, shape_r, dtype=jnp.float32)
    y1 = jax.random.normal(k1, shape_r, dtype=jnp.float32)
    o = jax.block_until_ready(fade_in(y0, y1, 0.3))
    r = y0 * 0.7 + y1 * 0.3
    assert o.shape == shape_r
    assert jnp.allclose(o, r, atol=1e-6, rtol=1e-6)

    print("KERNEL_OK")
</pallas_src>

<mosaic_0001>
module attributes {stable_mosaic.version = 11 : i64} {
  func.func @_fade_in_kernel(%arg0: i32, %arg1: memref<1xf32, #tpu.memory_space<smem>>, %arg2: memref<16x128xf32, #tpu.memory_space<vmem>>, %arg3: memref<16x128xf32, #tpu.memory_space<vmem>>, %arg4: memref<16x128xf32, #tpu.memory_space<vmem>>) attributes {dimension_semantics = [#tpu.dimension_semantics<parallel>], iteration_bounds = array<i64: 1>, scalar_prefetch = 0 : i64, scratch_operands = 0 : i64, tpu.core_type = #tpu.core_type<tc>, window_params = [{transform_indices = @transform_0, window_bounds = array<i64: 1>}, {transform_indices = @transform_1, window_bounds = array<i64: 16, 128>}, {transform_indices = @transform_2, window_bounds = array<i64: 16, 128>}, {transform_indices = @transform_3, window_bounds = array<i64: 16, 128>}]} {
    %c0 = arith.constant 0 : index
    %0 = memref.load %arg1[%c0] : memref<1xf32, #tpu.memory_space<smem>>
    %c0_0 = arith.constant 0 : index
    %c0_1 = arith.constant 0 : index
    %1 = vector.load %arg2[%c0_0, %c0_1] : memref<16x128xf32, #tpu.memory_space<vmem>>, vector<16x128xf32>
    %cst = arith.constant 1.000000e+00 : f32
    %2 = arith.subf %cst, %0 : f32
    %3 = vector.broadcast %2 : f32 to vector<16x128xf32>
    %4 = arith.mulf %1, %3 : vector<16x128xf32>
    %c0_2 = arith.constant 0 : index
    %c0_3 = arith.constant 0 : index
    %5 = vector.load %arg3[%c0_2, %c0_3] : memref<16x128xf32, #tpu.memory_space<vmem>>, vector<16x128xf32>
    %6 = vector.broadcast %0 : f32 to vector<16x128xf32>
    %7 = arith.mulf %5, %6 : vector<16x128xf32>
    %8 = arith.addf %4, %7 : vector<16x128xf32>
    %c0_4 = arith.constant 0 : index
    %c0_5 = arith.constant 0 : index
    %9 = vector.load %arg4[%c0_4, %c0_5] : memref<16x128xf32, #tpu.memory_space<vmem>>, vector<16x128xf32>
    tpu.vector_store %arg4[%c0_4, %c0_5], %8 {strides = array<i32>} : memref<16x128xf32, #tpu.memory_space<vmem>>, vector<16x128xf32>,
    return
  }
  func.func @transform_0(%arg0: i32) -> i32 {
    %c0_i32 = arith.constant 0 : i32
    %c0_i32_0 = arith.constant 0 : i32
    return %c0_i32 : i32
  }
  func.func @transform_1(%arg0: i32) -> (i32, i32) {
    %c0_i32 = arith.constant 0 : i32
    %c0_i32_0 = arith.constant 0 : i32
    return %arg0, %c0_i32 : i32, i32
  }
  func.func @transform_2(%arg0: i32) -> (i32, i32) {
    %c0_i32 = arith.constant 0 : i32
    %c0_i32_0 = arith.constant 0 : i32
    return %arg0, %c0_i32 : i32, i32
  }
  func.func @transform_3(%arg0: i32) -> (i32, i32) {
    %c0_i32 = arith.constant 0 : i32
    %c0_i32_0 = arith.constant 0 : i32
    return %arg0, %c0_i32 : i32, i32
  }
}

</mosaic_0001>

<bundles_post_ra>
// kernel: tpu_custom_call.1
= control target key start
LH: loop header
LB: loop body
LE: loop exit
PB: predicated region body
PF: predicated region fallthrough
CT: control target
= control target key end

     0   :  { %9 = vsyncpa [#allocation4], 0  ;;  %s216_s0 = inlined_call_operand.<no memory space> [shape: f32[1], index: 0, kind: input, shape index: {}]   ;;  %s217_s1 = inlined_call_operand.hbm [shape: f32[16,128], index: 1, kind: input, shape index: {}]   ;;  %s218_s2 = inlined_call_operand.hbm [shape: f32[16,128], index: 2, kind: input, shape index: {}]   ;;  %s219_s3 = inlined_call_operand.hbm [shape: f32[16,128], index: 3, kind: output, shape index: {}]  }
   0x1   :  { %10 = vsyncpa [#allocation7], 0 }
   0x2   :  { %11 = vsyncpa [#allocation5], 0  ;;  %s18_s14 = sshll.u32 %s217_s1, 4  ;;  %s167_s15 = smov [#allocation3]   ;;  %s19_s14 = int_to_ptr.hbm [resolvable:$true] %s18_s14 }
   0x3   :  { %s20_s16 = sshll.u32 %s167_s15, 4  ;;  %s31_s19 = sshll.u32 %s218_s2, 4  ;;  %s21_s16 = int_to_ptr.vmem [resolvable:$true] %s20_s16  ;;  %s32_s19 = int_to_ptr.hbm [resolvable:$true] %s31_s19 }
   0x4   :  { %s168_s20 = smov 128   ;;  %s169_s21 = smov 8  }
   0x5   :  { %26 = dma.hbm_to_vmem [thread:$0]  %s19_s14, 256, %s21_s16, [#allocation4], %s168_s20, %s168_s20, %s169_s21  }
   0x6   :  { %s170_s22 = smov [#allocation6]  }
   0x7   :  { %s33_s23 = sshll.u32 %s170_s22, 4  ;;  %s34_s23 = int_to_ptr.vmem [resolvable:$true] %s33_s23 }
   0x8   :  { %39 = dma.hbm_to_vmem [thread:$0]  %s32_s19, 256, %s34_s23, [#allocation7], %s168_s20, %s168_s20, %s169_s21  }
   0x9   :  { %161 = dma.done.wait [#allocation4], 256  }
   0xa   :  { %162 = vsyncadd [#allocation4], 4294967040 }
   0xb   :  { %163 = dma.done.wait [#allocation7], 256  }
   0xc   :  { %164 = vsyncadd [#allocation7], 4294967040  ;;  %s51_s24 = ssub.f32 1.0, %s216_s0  ;;  %v57_v1 = vstv %s216_s0  ;;  %v49_v2 = vld [vmem:[#allocation3] sm:$0xff]  ;;  %v55_v3 = vld [vmem:[#allocation6] sm:$0xff]  ;;  %s171_s27 = smov [#allocation8]  }
   0xd   :  { %v50_v4 = vld [vmem:[#allocation3 + $0x8] sm:$0xff]  ;;  %v58_v6 = vmul.f32 %v57_v1, %v55_v3  ;;  %v56_v8 = vld [vmem:[#allocation6 + $0x8] sm:$0xff]  ;;  %s68_s28 = sshll.u32 %s171_s27, 4  ;;  %s70_s4 = sshll.u32 %s219_s3, 4  ;;  %s69_s28 = int_to_ptr.vmem [resolvable:$true] %s68_s28  ;;  %s71_s4 = int_to_ptr.hbm [resolvable:$true] %s70_s4 }
   0xe   :  { %v52_v0 = vstv %s51_s24  ;;  %v59_v9 = vmul.f32 %v57_v1, %v56_v8 }
   0xf   :  { %v53_v5 = vmul.f32 %v52_v0, %v49_v2  ;;  %v54_v7 = vmul.f32 %v52_v0, %v50_v4 }
  0x11   :  { %v60_v10 = vadd.f32 %v58_v6, %v53_v5  ;;  %v61_v11 = vadd.f32 %v59_v9, %v54_v7 }
  0x13   :  { %62 = vst [vmem:[#allocation8] sm:$0xff] %v60_v10 }
  0x14   :  { %63 = vst [vmem:[#allocation8 + $0x8] sm:$0xff] %v61_v11 }
  0x15   :  { %76 = dma.vmem_to_hbm [thread:$0]  %s69_s28, 256, %s71_s4, [#allocation5], %s168_s20, %s168_s20, %s169_s21  }
  0x16   :  { %165 = dma.done.wait [#allocation5], 256  }
  0x17   :  { %166 = vsyncadd [#allocation5], 4294967040 }
  0x18   :  { %81 = vsyncpa [#allocation4], 1 }
  0x19   :  { %82 = vsyncpa [#allocation7], 1 }
  0x1a   :  { %83 = vsyncpa [#allocation5], 1 }

</bundles_post_ra>
